<compile_context>
chip_gen: v6e
topology: v6e:2x2x1
jax: 0.10.0
libtpu: 0.0.40
codegen_flags: <defaults>
</compile_context>

<pallas_src>
import functools

import jax
import jax.numpy as jnp
from jax import lax
from jax.experimental import pallas as pl
from jax.experimental.pallas import tpu as pltpu


# ---------------------------------------------------------------------------
# Expert kernel: grid = (batch_tiles, schedule_steps, hidden_tiles)
#   For schedule step i (selected expert e = sel_ids[i]) and hidden tile ht:
#     h    = relu(x @ W1[e][:, ht] + b1[e][ht])
#     out += combine[e, rows] * (h @ W2[e][ht, :])
#   Steps i >= n_active are padding and are skipped.  (b2 is added in XLA.)
# ---------------------------------------------------------------------------
def expert_kernel(sel_ref, nact_ref,
                  x_ref, comb_ref, w1_ref, b1_ref, w2_ref,
                  out_ref):
    i = pl.program_id(1)    # schedule step over selected experts
    ht = pl.program_id(2)   # hidden-dim tile

    @pl.when((i == 0) & (ht == 0))
    def _():
        out_ref[...] = jnp.zeros(out_ref.shape, out_ref.dtype)

    @pl.when(i < nact_ref[0])
    def _():
        x = x_ref[...]                                   # (tb, D), native dtype
        h = jnp.dot(x, w1_ref[0],
                    preferred_element_type=jnp.float32) + b1_ref[0]
        h = jnp.maximum(h, 0.0)                          # (tb, tH) f32
        y = jnp.dot(h.astype(w2_ref.dtype), w2_ref[0],
                    preferred_element_type=jnp.float32)  # (tb, D) f32
        out_ref[...] += comb_ref[0] * y                  # (tb, 1) * (tb, D)


# ---------------------------------------------------------------------------
# Tiling helpers
# ---------------------------------------------------------------------------
def _pick_block_h(H, D, w_itemsize, budget_bytes):
    """Largest hidden tile (multiple of 128 dividing H) whose double-buffered
    W1/W2/b1 blocks fit the VMEM budget."""
    per_th = 2 * (2 * D + 1) * w_itemsize       # 2x (W1 col-block + W2 row-block + b1)
    th_cap = max(budget_bytes // per_th, 128)
    if H <= th_cap:
        return H
    best = None
    t = 128
    while t <= min(H, th_cap):
        if H % t == 0:
            best = t
        t += 128
    # TODO(synk): if H has no multiple-of-128 divisor under the cap, pad H.
    return best if best is not None else H


# ---------------------------------------------------------------------------
# Wrapper
# ---------------------------------------------------------------------------
def moe_forward(x, wg, bg, w1, b1, w2, b2, *, top_k,
                block_b=None, block_h=None,
                vmem_budget_bytes=30 * 1024 * 1024):
    B, D = x.shape
    E = wg.shape[1]
    H = w1.shape[2]

    # --- gating + top-k routing in plain XLA (tiny; must precede pallas_call
    #     because the selected-expert ids drive the data-dependent index_maps).
    logits = jnp.dot(x.astype(jnp.float32), wg.astype(jnp.float32),
                     preferred_element_type=jnp.float32) + bg.astype(jnp.float32)
    probs = jax.nn.softmax(logits, axis=-1)                     # (B, E)
    vals, idx = lax.top_k(probs, top_k)                         # (B, K)

    onehot = jax.nn.one_hot(idx, E, dtype=jnp.float32)          # (B, K, E)
    combine = jnp.einsum("bke,bk->be", onehot, vals)            # (B, E) dense
    combine_t = combine.T[..., None]                            # (E, B, 1) f32

    # Second-layer bias folded outside the kernel:  sum_e combine[b,e]*b2[e].
    bias = jnp.dot(combine, b2[:, 0, :].astype(jnp.float32))    # (B, D) f32

    # Compacted schedule of selected experts, length S = min(E, B*top_k),
    # padded with the last active id (padded steps reuse the resident block
    # and are skipped in-kernel).
    S = min(E, B * top_k)
    active = jnp.any(combine > 0, axis=0)                                  # (E,)
    n_active = jnp.sum(active.astype(jnp.int32)).reshape(1)                # (1,)
    ids = jnp.sort(jnp.where(active, jnp.arange(E, dtype=jnp.int32),
                             jnp.int32(E)))[:S]
    last_active = ids[jnp.maximum(n_active[0] - 1, 0)]
    sel_ids = jnp.where(ids >= E, last_active, ids).astype(jnp.int32)      # (S,)

    # --- tiling: one batch tile by default (weights DMA'd once per expert);
    #     hidden tile auto-sized for the VMEM budget (works on 64 MiB v7x).
    tb = B if block_b is None else block_b
    assert B % tb == 0, "block_b must divide B"
    w_itemsize = jnp.dtype(w1.dtype).itemsize
    th = _pick_block_h(H, D, w_itemsize, vmem_budget_bytes) if block_h is None \
        else block_h
    assert H % th == 0, "block_h must divide H"

    # Explicit VMEM limit so double-buffering survives v7x's smaller VMEM.
    x_it = jnp.dtype(x.dtype).itemsize
    need = (2 * tb * D * x_it                 # x block (double buffered)
            + 2 * tb * D * 4                  # f32 out block
            + 2 * tb * 4                      # combine column
            + 2 * (D * th + th + th * D) * w_itemsize)   # W1/b1/W2 blocks
    vmem_limit = int(min(64 * 1024 * 1024, max(2 * need, 32 * 1024 * 1024)))

    grid = (B // tb, S, H // th)

    out = pl.pallas_call(
        expert_kernel,
        out_shape=jax.ShapeDtypeStruct((B, D), jnp.float32),
        grid_spec=pltpu.PrefetchScalarGridSpec(
            num_scalar_prefetch=2,
            grid=grid,
            in_specs=[
                # x tile (resident across expert/hidden axes)
                pl.BlockSpec((tb, D), lambda bt, i, ht, sel, na: (bt, 0)),
                # combine weights for the selected expert, this batch tile
                pl.BlockSpec((1, tb, 1), lambda bt, i, ht, sel, na: (sel[i], bt, 0)),
                # W1[e][:, ht], b1[e][ht]
                pl.BlockSpec((1, D, th), lambda bt, i, ht, sel, na: (sel[i], 0, ht)),
                pl.BlockSpec((1, 1, th), lambda bt, i, ht, sel, na: (sel[i], 0, ht)),
                # W2[e][ht, :]
                pl.BlockSpec((1, th, D), lambda bt, i, ht, sel, na: (sel[i], ht, 0)),
            ],
            out_specs=pl.BlockSpec((tb, D), lambda bt, i, ht, sel, na: (bt, 0)),
        ),
        compiler_params=pltpu.CompilerParams(
            dimension_semantics=("parallel", "arbitrary", "arbitrary"),
            vmem_limit_bytes=vmem_limit),
    )(sel_ids, n_active, x, combine_t, w1, b1, w2)

    return (out + bias).astype(x.dtype)


# ---------------------------------------------------------------------------
# Pure-JAX reference (intended per-row top-k routing semantics)
# ---------------------------------------------------------------------------
def moe_reference(x, wg, bg, w1, b1, w2, b2, *, top_k):
    logits = x @ wg + bg
    probs = jax.nn.softmax(logits, axis=-1)
    vals, idx = lax.top_k(probs, top_k)
    out = jnp.zeros(x.shape, jnp.float32)
    for i in range(top_k):
        e = idx[:, i]
        h = jnp.maximum(jnp.einsum("bd,bdh->bh", x, w1[e]) + b1[e, 0], 0.0)
        y = jnp.einsum("bh,bhd->bd", h, w2[e]) + b2[e, 0]
        out = out + y * vals[:, i:i + 1]
    return out


if __name__ == "__main__":
    def make_params(key, B, D, H, E):
        ks = jax.random.split(key, 8)

        def uinit(k, shape, fan_in):
            bound = 1.0 / jnp.sqrt(fan_in)
            return jax.random.uniform(k, shape, jnp.float32, -bound, bound)

        x = jax.random.normal(ks[0], (B, D), jnp.float32)
        wg = uinit(ks[1], (D, E), D)          # gating Linear(D, E), math layout
        bg = uinit(ks[2], (1, E), D)
        w1 = uinit(ks[3], (E, D, H), D)       # expert fc1
        b1 = uinit(ks[4], (E, 1, H), D)
        w2 = uinit(ks[5], (E, H, D), H)       # expert fc2
        b2 = uinit(ks[6], (E, 1, D), H)
        return x, wg, bg, w1, b1, w2, b2

    key = jax.random.PRNGKey(0)
    k1, k2 = jax.random.split(key)

    # ---- test 1: f32, tight check --------------------------------------
    B, D, H, E, TOP_K = 16, 128, 256, 8, 2
    x, wg, bg, w1, b1, w2, b2 = make_params(k1, B, D, H, E)
    moe = jax.jit(functools.partial(moe_forward, top_k=TOP_K))
    out = jax.block_until_ready(moe(x, wg, bg, w1, b1, w2, b2))
    ref = moe_reference(x, wg, bg, w1, b1, w2, b2, top_k=TOP_K)
    assert out.shape == (B, D) and out.dtype == jnp.float32
    assert jnp.allclose(out, ref, atol=1e-4, rtol=1e-4)

    # ---- test 2: bf16 x / expert weights (perf path), loose check ------
    xb = x.astype(jnp.bfloat16)
    w1b, b1b = w1.astype(jnp.bfloat16), b1.astype(jnp.bfloat16)
    w2b, b2b = w2.astype(jnp.bfloat16), b2.astype(jnp.bfloat16)
    moe_bf = jax.jit(functools.partial(moe_forward, top_k=TOP_K))
    out_bf = jax.block_until_ready(moe_bf(xb, wg, bg, w1b, b1b, w2b, b2b))
    ref_bf = moe_reference(xb.astype(jnp.float32), wg, bg,
                           w1b.astype(jnp.float32), b1b.astype(jnp.float32),
                           w2b.astype(jnp.float32), b2b.astype(jnp.float32),
                           top_k=TOP_K)
    assert out_bf.dtype == jnp.bfloat16
    assert jnp.allclose(out_bf.astype(jnp.float32), ref_bf, atol=3e-2, rtol=3e-2)

    # ---- test 3: f32, many experts so schedule S = B*top_k < E ---------
    B2, E2 = 4, 32
    x2, wg2, bg2, w12, b12, w22, b22 = make_params(k2, B2, D, H, E2)
    moe2 = jax.jit(functools.partial(moe_forward, top_k=TOP_K))
    out2 = jax.block_until_ready(moe2(x2, wg2, bg2, w12, b12, w22, b22))
    ref2 = moe_reference(x2, wg2, bg2, w12, b12, w22, b22, top_k=TOP_K)
    assert jnp.allclose(out2, ref2, atol=1e-4, rtol=1e-4)

    print("KERNEL_OK")
</pallas_src>

<mosaic_0001>
module attributes {stable_mosaic.version = 11 : i64} {
  func.func @expert_kernel(%arg0: i32, %arg1: i32, %arg2: i32, %arg3: memref<8xi32, #tpu.memory_space<smem>>, %arg4: memref<1xi32, #tpu.memory_space<smem>>, %arg5: memref<16x128xf32, #tpu.memory_space<vmem>>, %arg6: memref<1x16x1xf32, #tpu.memory_space<vmem>>, %arg7: memref<1x128x256xf32, #tpu.memory_space<vmem>>, %arg8: memref<1x1x256xf32, #tpu.memory_space<vmem>>, %arg9: memref<1x256x128xf32, #tpu.memory_space<vmem>>, %arg10: memref<16x128xf32, #tpu.memory_space<vmem>>) attributes {dimension_semantics = [#tpu.dimension_semantics<parallel>, #tpu.dimension_semantics<arbitrary>, #tpu.dimension_semantics<arbitrary>], iteration_bounds = array<i64: 1, 8, 1>, scalar_prefetch = 2 : i64, scratch_operands = 0 : i64, tpu.core_type = #tpu.core_type<tc>, window_params = [{transform_indices = @transform_0, window_bounds = array<i64: 16, 128>}, {transform_indices = @transform_1, window_bounds = array<i64: 1, 16, 1>}, {transform_indices = @transform_2, window_bounds = array<i64: 1, 128, 256>}, {transform_indices = @transform_3, window_bounds = array<i64: 1, 1, 256>}, {transform_indices = @transform_4, window_bounds = array<i64: 1, 256, 128>}, {transform_indices = @transform_5, window_bounds = array<i64: 16, 128>}]} {
    %c0_i32 = arith.constant 0 : i32
    %0 = arith.cmpi eq, %arg1, %c0_i32 : i32
    %c0_i32_0 = arith.constant 0 : i32
    %1 = arith.cmpi eq, %arg2, %c0_i32_0 : i32
    %2 = arith.andi %0, %1 : i1
    %3 = arith.extui %2 : i1 to i32
    %c0_i32_1 = arith.constant 0 : i32
    %4 = arith.cmpi ne, %3, %c0_i32_1 : i32
    scf.if %4 {
      %cst = arith.constant 0.000000e+00 : f32
      %9 = vector.broadcast %cst : f32 to vector<16x128xf32>
      %c0_3 = arith.constant 0 : index
      %c0_4 = arith.constant 0 : index
      %10 = vector.load %arg10[%c0_3, %c0_4] : memref<16x128xf32, #tpu.memory_space<vmem>>, vector<16x128xf32>
      tpu.vector_store %arg10[%c0_3, %c0_4], %9 {strides = array<i32>} : memref<16x128xf32, #tpu.memory_space<vmem>>, vector<16x128xf32>,
    } else {
    }
    %c0 = arith.constant 0 : index
    %5 = memref.load %arg4[%c0] : memref<1xi32, #tpu.memory_space<smem>>
    %6 = arith.cmpi slt, %arg1, %5 : i32
    %7 = arith.extui %6 : i1 to i32
    %c0_i32_2 = arith.constant 0 : i32
    %8 = arith.cmpi ne, %7, %c0_i32_2 : i32
    scf.if %8 {
      %c0_3 = arith.constant 0 : index
      %c0_4 = arith.constant 0 : index
      %9 = vector.load %arg5[%c0_3, %c0_4] : memref<16x128xf32, #tpu.memory_space<vmem>>, vector<16x128xf32>
      %c0_5 = arith.constant 0 : index
      %c0_6 = arith.constant 0 : index
      %c0_7 = arith.constant 0 : index
      %10 = vector.load %arg7[%c0_5, %c0_6, %c0_7] : memref<1x128x256xf32, #tpu.memory_space<vmem>>, vector<1x128x256xf32>
      %11 = vector.shape_cast %10 : vector<1x128x256xf32> to vector<128x256xf32>
      %cst = arith.constant dense<0.000000e+00> : vector<16x256xf32>
      %12 = tpu.matmul %9, %11, %cst {dimension_numbers = #tpu.dot_dimension_numbers<[1], [0], [0], [1], [0, 0, 1, 1], [], []>} : vector<16x128xf32>, vector<128x256xf32>, vector<16x256xf32> -> vector<16x256xf32>
      %c0_8 = arith.constant 0 : index
      %c0_9 = arith.constant 0 : index
      %c0_10 = arith.constant 0 : index
      %13 = vector.load %arg8[%c0_8, %c0_9, %c0_10] : memref<1x1x256xf32, #tpu.memory_space<vmem>>, vector<1x1x256xf32>
      %14 = vector.shape_cast %13 : vector<1x1x256xf32> to vector<1x256xf32>
      %15 = vector.broadcast %14 : vector<1x256xf32> to vector<16x256xf32>
      %16 = arith.addf %12, %15 : vector<16x256xf32>
      %cst_11 = arith.constant 0.000000e+00 : f32
      %17 = vector.broadcast %cst_11 : f32 to vector<16x256xf32>
      %18 = arith.maximumf %16, %17 : vector<16x256xf32>
      %c0_12 = arith.constant 0 : index
      %c0_13 = arith.constant 0 : index
      %c0_14 = arith.constant 0 : index
      %19 = vector.load %arg9[%c0_12, %c0_13, %c0_14] : memref<1x256x128xf32, #tpu.memory_space<vmem>>, vector<1x256x128xf32>
      %20 = vector.shape_cast %19 : vector<1x256x128xf32> to vector<256x128xf32>
      %cst_15 = arith.constant dense<0.000000e+00> : vector<16x128xf32>
      %21 = tpu.matmul %18, %20, %cst_15 {dimension_numbers = #tpu.dot_dimension_numbers<[1], [0], [0], [1], [0, 0, 1, 1], [], []>} : vector<16x256xf32>, vector<256x128xf32>, vector<16x128xf32> -> vector<16x128xf32>
      %c0_16 = arith.constant 0 : index
      %c0_17 = arith.constant 0 : index
      %22 = vector.load %arg10[%c0_16, %c0_17] : memref<16x128xf32, #tpu.memory_space<vmem>>, vector<16x128xf32>
      %c0_18 = arith.constant 0 : index
      %c0_19 = arith.constant 0 : index
      %c0_20 = arith.constant 0 : index
      %23 = vector.load %arg6[%c0_18, %c0_19, %c0_20] : memref<1x16x1xf32, #tpu.memory_space<vmem>>, vector<1x16x1xf32>
      %24 = vector.shape_cast %23 : vector<1x16x1xf32> to vector<16x1xf32>
      %25 = vector.broadcast %24 : vector<16x1xf32> to vector<16x128xf32>
      %26 = arith.mulf %25, %21 : vector<16x128xf32>
      %27 = arith.addf %22, %26 : vector<16x128xf32>
      %c0_21 = arith.constant 0 : index
      %c0_22 = arith.constant 0 : index
      %28 = vector.load %arg10[%c0_21, %c0_22] : memref<16x128xf32, #tpu.memory_space<vmem>>, vector<16x128xf32>
      tpu.vector_store %arg10[%c0_21, %c0_22], %27 {strides = array<i32>} : memref<16x128xf32, #tpu.memory_space<vmem>>, vector<16x128xf32>,
    } else {
    }
    return
  }
  func.func @transform_0(%arg0: i32, %arg1: i32, %arg2: i32, %arg3: memref<8xi32, #tpu.memory_space<smem>>, %arg4: memref<1xi32, #tpu.memory_space<smem>>) -> (i32, i32) {
    %c0_i32 = arith.constant 0 : i32
    %c0_i32_0 = arith.constant 0 : i32
    return %arg0, %c0_i32 : i32, i32
  }
  func.func @transform_1(%arg0: i32, %arg1: i32, %arg2: i32, %arg3: memref<8xi32, #tpu.memory_space<smem>>, %arg4: memref<1xi32, #tpu.memory_space<smem>>) -> (i32, i32, i32) {
    %0 = arith.index_cast %arg1 : i32 to index
    %1 = memref.load %arg3[%0] : memref<8xi32, #tpu.memory_space<smem>>
    %c0_i32 = arith.constant 0 : i32
    %c0_i32_0 = arith.constant 0 : i32
    return %1, %arg0, %c0_i32 : i32, i32, i32
  }
  func.func @transform_2(%arg0: i32, %arg1: i32, %arg2: i32, %arg3: memref<8xi32, #tpu.memory_space<smem>>, %arg4: memref<1xi32, #tpu.memory_space<smem>>) -> (i32, i32, i32) {
    %0 = arith.index_cast %arg1 : i32 to index
    %1 = memref.load %arg3[%0] : memref<8xi32, #tpu.memory_space<smem>>
    %c0_i32 = arith.constant 0 : i32
    %c0_i32_0 = arith.constant 0 : i32
    return %1, %c0_i32, %arg2 : i32, i32, i32
  }
  func.func @transform_3(%arg0: i32, %arg1: i32, %arg2: i32, %arg3: memref<8xi32, #tpu.memory_space<smem>>, %arg4: memref<1xi32, #tpu.memory_space<smem>>) -> (i32, i32, i32) {
    %0 = arith.index_cast %arg1 : i32 to index
    %1 = memref.load %arg3[%0] : memref<8xi32, #tpu.memory_space<smem>>
    %c0_i32 = arith.constant 0 : i32
    %c0_i32_0 = arith.constant 0 : i32
    return %1, %c0_i32, %arg2 : i32, i32, i32
  }
  func.func @transform_4(%arg0: i32, %arg1: i32, %arg2: i32, %arg3: memref<8xi32, #tpu.memory_space<smem>>, %arg4: memref<1xi32, #tpu.memory_space<smem>>) -> (i32, i32, i32) {
    %0 = arith.index_cast %arg1 : i32 to index
    %1 = memref.load %arg3[%0] : memref<8xi32, #tpu.memory_space<smem>>
    %c0_i32 = arith.constant 0 : i32
    %c0_i32_0 = arith.constant 0 : i32
    return %1, %arg2, %c0_i32 : i32, i32, i32
  }
  func.func @transform_5(%arg0: i32, %arg1: i32, %arg2: i32, %arg3: memref<8xi32, #tpu.memory_space<smem>>, %arg4: memref<1xi32, #tpu.memory_space<smem>>) -> (i32, i32) {
    %c0_i32 = arith.constant 0 : i32
    %c0_i32_0 = arith.constant 0 : i32
    return %arg0, %c0_i32 : i32, i32
  }
}

</mosaic_0001>

<bundles_post_ra>
// kernel: moe_forward.1
= control target key start
LH: loop header
LB: loop body
LE: loop exit
PB: predicated region body
PF: predicated region fallthrough
CT: control target
= control target key end

     0   :  { %s1571_s0 = inlined_call_operand.vmem [shape: s32[8], index: 0, kind: input, shape index: {}]   ;;  %s1572_s1 = inlined_call_operand.<no memory space> [shape: s32[1], index: 1, kind: input, shape index: {}]   ;;  %s1573_s2 = inlined_call_operand.vmem [shape: f32[16,128], index: 2, kind: input, shape index: {}]   ;;  %s1574_s3 = inlined_call_operand.vmem [shape: f32[8,16,1], index: 3, kind: input, shape index: {}]   ;;  %s1575_s4 = inlined_call_operand.hbm [shape: f32[8,128,256], index: 4, kind: input, shape index: {}]   ;;  %s1576_s5 = inlined_call_operand.vmem [shape: f32[8,1,256], index: 5, kind: input, shape index: {}]   ;;  %s1577_s6 = inlined_call_operand.hbm [shape: f32[8,256,128], index: 6, kind: input, shape index: {}]   ;;  %s1578_s7 = inlined_call_operand.vmem [shape: f32[16,128], index: 7, kind: output, shape index: {}]  }
   0x1   :  { %s12_s26 = sshll.u32 %s1571_s0, 4  ;;  %16 = sst [smem:[#allocation4]] %s1572_s1  ;;  %s13_s26 = int_to_ptr.vmem [resolvable:$true] %s12_s26 }
   0x2   :  { %s1022_s29 = scalar_lea.vmem %s13_s26, 16  ;;  %p1027_p1 = scmp.lt.s32.totalorder %s13_s26, %s13_s26 }
   0x3   :  { %p1023_p0 = scmp.ne.s32.totalorder %s13_s26, %s1022_s29  ;;  %p1028_p2 = scmp.lt.s32.totalorder %s1022_s29, %s1022_s29 }
   0x5   :  { %p1029_p3 = por %p1028_p2, %p1027_p1 }
   0x7   :  { %p1030_p4 = pnand %p1029_p3, %p1023_p0 }
   0x9   :  { %1033 = shalt.err (!%p1030_p4)  }
   0xa   :  { %s1172_s30 = smov [#allocation3]  }
   0xb   :  { %15 = dma.vmem_to_smem %s13_s26, 16, %s1172_s30, [#allocation2] }
   0xc   :  { %1126 = dma.done.wait [#allocation2], 16 }
   0xd   :  { %1127 = vsyncadd [#allocation2], 4294967280 }
   0xe   :  { %18 = sfence }
   0xf   :  { %19 = vsyncpa [#allocation6], 0 }
  0x10   :  { %21 = vsyncpa [#allocation6 + $0x1], 0 }
  0x11   :  { %22 = vsyncpa [#allocation8], 0 }
  0x12   :  { %24 = vsyncpa [#allocation8 + $0x1], 0  ;;  %s1228_s0 = smov 0   ;;  %s1230_s1 = smov 0  }
  0x13   :  { %s1232_s8 = smov 0   ;;  %s1234_s9 = smov 0  }
  0x14   :  { %s1236_s10 = smov 0   ;;  %s1238_s11 = smov 0  }
  0x15   :  { %s1240_s12 = smov 0   ;;  %s1242_s13 = smov 0  }
  0x16   :  { %s1244_s14 = smov 0  }
  0x17 LB: > { %1586 = sst [smem:[#allocation16_spill]] %s1158_s11  ;;  %s45_s15 = sadd.s32 1, %s1166_s13  ;;  %s1170_s14 = sphi %s1244_s14, %s30_s14   ;;  %s1166_s13 = sphi %s1242_s13, %s1614_s13   ;;  %s1162_s12 = sphi %s1240_s12, %s1613_s12   ;;  %s1158_s11 = sphi %s1238_s11, %s1606_s11   ;;  %s1154_s10 = sphi %s1236_s10, %s1612_s10   ;;  %s1150_s9 = sphi %s1234_s9, %s1611_s9   ;;  %s1146_s8 = sphi %s1232_s8, %s1610_s8   ;;  %s1142_s1 = sphi %s1230_s1, %s1609_s1   ;;  %s1138_s0 = sphi %s1228_s0, %s1608_s0  }
  0x18   : > { %s857_s16 = sadd.s32 4294967295, %s1170_s14   ;;  %p47_p5 = scmp.ge.s32.totalorder %s45_s15, 8 }
  0x19   : > { %s109_s17 = sld [smem:[#allocation3 + %s1166_s13]]  ;;  %p123_p6 = scmp.ne.s32.totalorder %s1158_s11, %s1154_s10 }
  0x1a   : > { %s1616_s15 = smov (%p47_p5, %s45_s15), 0  ;;  %p1582_p7 = scmp.eq.s32.totalorder %s1170_s14, 0 }
  0x1b   : > { %1587 = sst [smem:[#allocation17_spill]] %s1616_s15  ;;  %p129_p8 = scmp.ne.s32.totalorder %s1154_s10, %s1150_s9 }
  0x1c   : > { %s110_s18 = sld [smem:[#allocation3 + %s1616_s15]]  ;;  %p1281_p9 = scmp.eq.s32.totalorder %s857_s16, 0 }
  0x1d   : > { %s116_s20 = sadd.s32 1, %s1158_s11  ;;  %p1288_p10 = por %p1582_p7, %p123_p6 }
  0x1e   : > { %s1588_s19 = scalar_select %p1281_p9, 1, 0 }
  0x1f   : > { %p1294_p11 = por %p1281_p9, %p129_p8  ;;  %s1299_s23 = sld [smem:[#allocation3 + %s1166_s13]] }
  0x20   : > { %s263_s24 = sand.u32 1, %s1158_s11   ;;  %p1581_p12 = scmp.lt.s32.totalorder %s1170_s14, 8 }
  0x21   : > { %s1590_s22 = scalar_select %p1294_p11, 1, 0 }
  0x22   : > { %s861_s25 = sshll.u32 %s263_s24, 8  ;;  %s111_s26 = ssub.s32 %s109_s17, %s110_s18 }
  0x23   : > { %p1307_p13 = pnand %p1581_p12, %p1288_p10  ;;  %p114_p0 = scmp.eq.s32.totalorder %s111_s26, 0 }
  0x24   : > { %s267_s28 = scalar_lea.vmem [#allocation5], %s861_s25  ;;  %p867_p1 = scmp.ge.s32.totalorder %s1170_s14, 1 }
  0x25   : > { %s277_s29 = sshll.u32 %s267_s28, 4  ;;  %p323_p2 = scmp.lt.s32.totalorder %s1170_s14, 9  ;;  %s1323_s29 = int_to_ptr.vmem [resolvable:$true] %s277_s29 }
  0x26   : > { %s921_s30 = scalar_select %p1288_p10, [#allocation3], [#allocation9] }
  0x27   : > { %s1314_s9 = scalar_select %p114_p0, %s1158_s11, %s116_s20  }
  0x28   : > { %s922_s16 = scalar_select %p1288_p10, %s1166_s13, 0 }
  0x29   : > { %1592 = sst [smem:[#allocation18_spill]] %s1314_s9  ;;  %s1618_s30 = smov (!%p1581_p12, %s921_s30), [#allocation11] }
  0x2a   : > { %s1620_s16 = smov (!%p1581_p12, %s922_s16), 0  ;;  %p1327_p3 = pnand %p867_p1, %p323_p2 }
  0x2b   : > { %s268_s17 = sld [smem:[%s1618_s30 + %s1620_s16]]  ;;  %s1341_s9 = scalar_lea.sflag [#allocation6], %s263_s24 }
  0x2c   : > { %s1593_s18 = scalar_select %p1327_p3, 1, 0 }
  0x2d   : > { %s1332_s25 = sld [smem:[#allocation3 + %s1616_s15]]  ;;  %p1036_p6 = pneg %p1307_p13 }
  0x31   : > { %s879_s20 = sshll.u32 %s268_s17, 12  ;;  %s1039_s17 = scalar_lea.hbm %s1575_s4, 32768 }
  0x32   : > { %s1337_s28 = scalar_lea.hbm %s1575_s4, %s879_s20 }
  0x33   : > { %s1034_s30 = scalar_lea.hbm %s1337_s28, 4096  ;;  %p1040_p0 = scmp.lt.s32.totalorder %s1337_s28, %s1575_s4 }
  0x34   : > { %p1035_p5 = scmp.ne.s32.totalorder %s1337_s28, %s1034_s30  ;;  %p1041_p1 = scmp.lt.s32.totalorder %s1039_s17, %s1034_s30 }
  0x36   : > { %p1037_p8 = pnand %p1036_p6, %p1035_p5  ;;  %p1042_p2 = por %p1041_p1, %p1040_p0 }
  0x38   : > { %p1038_p10 = pneg %p1037_p8 }
  0x3a   : > { %p1043_p12 = pnand %p1042_p2, %p1038_p10 }
  0x3c   : > { %1046 = shalt.err (!%p1043_p12)
}
  0x3d   : > { %s1047_s24 = scalar_lea.vmem %s1323_s29, 4096  ;;  %s1173_s20 = smov [#allocation5]  }
  0x3e   : > { %p1048_p4 = scmp.ne.s32.totalorder %s1323_s29, %s1047_s24  ;;  %s1052_s21 = sshll.u32 %s1173_s20, 4  ;;  %s1053_s21 = int_to_ptr.vmem [resolvable:$false] %s1052_s21 }
  0x3f   : > { %s1054_s15 = scalar_lea.vmem %s1053_s21, 8192  ;;  %p1055_p8 = scmp.lt.s32.totalorder %s1323_s29, %s1053_s21 }
  0x40   : > { %p1050_p7 = pnand %p1048_p4, %p1036_p6  ;;  %p1056_p11 = scmp.lt.s32.totalorder %s1054_s15, %s1047_s24 }
  0x42   : > { %p1051_p5 = pneg %p1050_p7  ;;  %p1057_p3 = por %p1056_p11, %p1055_p8 }
  0x44   : > { %p1058_p9 = pnand %p1057_p3, %p1051_p5 }
  0x46   : > { %1061 = shalt.err (!%p1058_p9)
}
  0x47   : > { %s1174_s11 = smov 256   ;;  %s1175_s30 = smov 16  }
  0x48   : > { %934 = dma.hbm_to_vmem [thread:$0]  (!%p1307_p13), %s1337_s28, 4096, %s1323_s29, %s1341_s9, %s1174_s11, %s1174_s11, %s1175_s30  }
  0x49   : > { %p189_p7 = scmp.ne.s32.totalorder %s1142_s1, %s1138_s0  ;;  %s176_s16 = sadd.s32 1, %s1146_s8 }
  0x4a   : > { %p1594_p9 = scmp.eq.s32.totalorder %s1170_s14, 0  ;;  %p1595_p11 = scmp.ne.s32.totalorder %s1146_s8, %s1142_s1 }
  0x4b   : > { %s171_s17 = ssub.s32 %s1299_s23, %s1332_s25  ;;  %p1596_p3 = scmp.ne.s32.totalorder %s1588_s19, 0 }
  0x4c   : > { %p185_p12 = por %p1595_p11, %p1594_p9  ;;  %p174_p6 = scmp.eq.s32.totalorder %s171_s17, 0 }
  0x4d   : > { %p1374_p4 = por %p189_p7, %p1596_p3  ;;  %s301_s24 = sand.u32 1, %s1146_s8  }
  0x4e   : > { %p1598_p10 = scmp.lt.s32.totalorder %s1170_s14, 8  ;;  %s864_s0 = sshll.u32 %s301_s24, 8 }
  0x4f   : > { %s1597_s26 = scalar_select %p1374_p4, 1, 0 }
  0x50   : > { %p1381_p0 = pnand %p1598_p10, %p185_p12  ;;  %p1600_p13 = pmov %p1598_p10 }
  0x51   : > { %s1386_s27 = scalar_select %p174_p6, %s1146_s8, %s176_s16  }
  0x52   : > { %s924_s29 = scalar_select %p185_p12, [#allocation3], [#allocation10] }
  0x53   : > { %s925_s9 = scalar_select %p185_p12, %s1166_s13, 0 }
  0x54   : > { %s1622_s29 = smov (!%p1600_p13, %s924_s29), [#allocation12]  ;;  %p1601_p1 = pmov %p1598_p10 }
  0x55   : > { %s305_s23 = scalar_lea.vmem [#allocation7], %s864_s0  ;;  %s1400_s30 = scalar_lea.sflag [#allocation8], %s301_s24 }
  0x56   : > { %s1624_s9 = smov (!%p1601_p1, %s925_s9), 0  ;;  %s315_s25 = sshll.u32 %s305_s23, 4  ;;  %s1393_s25 = int_to_ptr.vmem [resolvable:$true] %s315_s25 }
  0x57   : > { %s306_s19 = sld [smem:[%s1622_s29 + %s1624_s9]]  ;;  %p1064_p5 = pneg %p1381_p0 }
  0x58   : > { %s1067_s29 = scalar_lea.hbm %s1577_s6, 32768 }
  0x5d   : > { %s880_s28 = sshll.u32 %s306_s19, 12 }
  0x5e   : > { %s1398_s11 = scalar_lea.hbm %s1577_s6, %s880_s28 }
  0x5f   : > { %s1062_s16 = scalar_lea.hbm %s1398_s11, 4096  ;;  %p1068_p9 = scmp.lt.s32.totalorder %s1398_s11, %s1577_s6 }
  0x60   : > { %p1063_p2 = scmp.ne.s32.totalorder %s1398_s11, %s1062_s16  ;;  %p1069_p11 = scmp.lt.s32.totalorder %s1067_s29, %s1062_s16 }
  0x62   : > { %p1065_p8 = pnand %p1064_p5, %p1063_p2  ;;  %p1070_p12 = por %p1069_p11, %p1068_p9 }
  0x64   : > { %p1066_p7 = pneg %p1065_p8 }
  0x66   : > { %p1071_p3 = pnand %p1070_p12, %p1066_p7 }
  0x68   : > { %1074 = shalt.err (!%p1071_p3)
}
  0x69   : > { %s1075_s24 = scalar_lea.vmem %s1393_s25, 4096  ;;  %s1176_s23 = smov [#allocation7]  }
  0x6a   : > { %p1076_p6 = scmp.ne.s32.totalorder %s1393_s25, %s1075_s24  ;;  %s1080_s28 = sshll.u32 %s1176_s23, 4  ;;  %s1081_s28 = int_to_ptr.vmem [resolvable:$false] %s1080_s28 }
  0x6b   : > { %s1082_s21 = scalar_lea.vmem %s1081_s28, 8192  ;;  %p1083_p1 = scmp.lt.s32.totalorder %s1393_s25, %s1081_s28 }
  0x6c   : > { %p1078_p10 = pnand %p1076_p6, %p1064_p5  ;;  %p1084_p2 = scmp.lt.s32.totalorder %s1082_s21, %s1075_s24 }
  0x6e   : > { %p1079_p13 = pneg %p1078_p10  ;;  %p1085_p8 = por %p1084_p2, %p1083_p1 }
  0x70   : > { %p1086_p4 = pnand %p1085_p8, %p1079_p13 }
  0x72   : > { %1089 = shalt.err (!%p1086_p4)
}
  0x73   : > { %s1177_s15 = smov 128   ;;  %s1178_s16 = smov 8  }
  0x74   : > { %939 = dma.hbm_to_vmem [thread:$0]  (!%p1381_p0), %s1398_s11, 4096, %s1393_s25, %s1400_s30, %s1177_s15, %s1177_s15, %s1178_s16  }
  0x75   : > { %p1602_p5 = scmp.ne.s32.totalorder %s1593_s18, 0 }
  0x76   : > { %s329_s17 = sand.u32 (!%p1602_p5), 1, %s1154_s10   ;;  %p1603_p7 = scmp.ne.s32.totalorder (!%p1602_p5), %s1590_s22, 0 }
  0x77   : > { %327 = sbr.rel (%p1602_p5) target bundleno = 593 (0x251), region = 40  ;;  %s868_s0 = sshll.u32 (!%p1602_p5), %s329_s17, 8 }
  0x78   : > { %s330_s29 = scalar_lea.sflag (!%p1602_p5), [#allocation6], %s329_s17  ;;  %s1424_s9 = scalar_lea.vmem (!%p1602_p5), [#allocation5], %s868_s0 }
  0x7c   : > { %1129 = dma.done.wait (%p1603_p7), %s330_s29, 4096  }
  0x7d   : > { %1131 = vsyncadd (%p1603_p7), %s330_s29, 4294963200  ;;  %s338_s19 = sand.u32 1, %s1142_s1   ;;  %p1604_p4 = scmp.ne.s32.totalorder %s1597_s26, 0 }
  0x7e   : > { %s869_s20 = sshll.u32 %s338_s19, 8  ;;  %s339_s25 = scalar_lea.sflag [#allocation8], %s338_s19 }
  0x7f   : > { %s1431_s11 = scalar_lea.vmem [#allocation7], %s869_s20 }
  0x80   : > { %1133 = dma.done.wait (%p1604_p4), %s339_s25, 4096  }
  0x81   : > { %1135 = vsyncadd (%p1604_p4), %s339_s25, 4294963200  ;;  %p437_p0 = scmp.eq.s32.totalorder %s1162_s12, 0  ;;  %s404_s18 = sld [smem:[#allocation3 + %s1162_s12]] }
  0x82   : > { %s418_s30 = sld [smem:[#allocation3 + %s1162_s12]]  ;;  %v1179_v0 = vmov (%p437_p0), 0.0  }
  0x83   : > { %443 = vst [vmem:[%s1578_s7] sm:$0xff] (%p437_p0), %v1179_v0  ;;  %444 = vst [vmem:[%s1578_s7 + $0x8] sm:$0xff] (%p437_p0), %v1179_v0 }
  0x87   : > { %p406_p9 = scmp.lt.s32.totalorder %s404_s18, 7 }
  0x88   : > { %p420_p11 = scmp.lt.s32.totalorder %s418_s30, 7  ;;  %442 = sbr.rel (!%p437_p0) target bundleno = 141 (0x8d), region = 52 }
  0x89   : > { %s1626_s18 = smov (!%p406_p9, %s404_s18), 7 }
  0x8a   : > { %s1628_s30 = smov (!%p420_p11, %s418_s30), 7  ;;  %s881_s22 = sshll.u32 %s1626_s18, 4 }
  0x8b   : > { %s1443_s28 = scalar_lea.vmem %s1574_s3, %s881_s22  ;;  %s872_s21 = sshll.u32 %s1628_s30, 1 }
  0x8c   : > { %s1448_s16 = scalar_lea.vmem %s1576_s5, %s872_s21 }
  0x8d PF: > { %s445_s20 = sld [smem:[#allocation4]] }
  0x93   : > { %p874_p12 = scmp.ge.s32.totalorder %s1162_s12, %s445_s20 }
  0x95   : > { %449 = sbr.rel (%p874_p12) target bundleno = 593 (0x251), region = 56 }
  0x9a   : > { %v483_v1 = vld [vmem:[%s1424_s9 + $0xf8] sm:$0xff]  ;;  %v482_v2 = vld [vmem:[%s1424_s9 + $0xf0] sm:$0xff]  ;;  %v481_v3 = vld [vmem:[%s1424_s9 + $0xe8] sm:$0xff]  ;;  %v1180_v5 = vmov 0.0  }
  0x9b   : > { %496 = vmatprep.subr.mxu0 %v483_v1  ;;  %v480_v4 = vld [vmem:[%s1424_s9 + $0xe0] sm:$0xff]  ;;  %560 = vmatprep.mubr.f32.mxu0 %v1180_v5  ;;  %v479_v6 = vld [vmem:[%s1424_s9 + $0xd8] sm:$0xff]  ;;  %v478_v7 = vld [vmem:[%s1424_s9 + $0xd0] sm:$0xff] }
  0x9c   : > { %497 = vmatpush1.msra.mxu0 %v482_v2  ;;  %v477_v8 = vld [vmem:[%s1424_s9 + $0xc8] sm:$0xff]  ;;  %v476_v9 = vld [vmem:[%s1424_s9 + $0xc0] sm:$0xff]  ;;  %v475_v10 = vld [vmem:[%s1424_s9 + $0xb8] sm:$0xff] }
  0x9d   : > { %498 = vmatprep.subr.mxu0 %v481_v3  ;;  %v474_v11 = vld [vmem:[%s1424_s9 + $0xb0] sm:$0xff]  ;;  %v473_v12 = vld [vmem:[%s1424_s9 + $0xa8] sm:$0xff]  ;;  %v472_v13 = vld [vmem:[%s1424_s9 + $0xa0] sm:$0xff] }
  0x9e   : > { %499 = vmatpush1.msra.mxu0 %v480_v4  ;;  %v471_v14 = vld [vmem:[%s1424_s9 + $0x98] sm:$0xff]  ;;  %v470_v15 = vld [vmem:[%s1424_s9 + $0x90] sm:$0xff]  ;;  %v469_v18 = vld [vmem:[%s1424_s9 + $0x88] sm:$0xff] }
  0x9f   : > { %500 = vmatprep.subr.mxu0 %v479_v6  ;;  %v608_v16 = vld [vmem:[%s1431_s11 + $0xf8] sm:$0xff]  ;;  %v607_v19 = vld [vmem:[%s1431_s11 + $0xf0] sm:$0xff]  ;;  %v468_v21 = vld [vmem:[%s1424_s9 + $0x80] sm:$0xff] }
  0xa0   : > { %501 = vmatpush1.msra.mxu0 %v478_v7  ;;  %v592_v17 = vld [vmem:[%s1431_s11 + $0x78] sm:$0xff]  ;;  %883 = vmatprep.subr.mxu1 %v608_v16  ;;  %v591_v20 = vld [vmem:[%s1431_s11 + $0x70] sm:$0xff]  ;;  %v606_v22 = vld [vmem:[%s1431_s11 + $0xe8] sm:$0xff]  ;;  %v486_v7 = vlaneseq }
  0xa1   : > { %502 = vmatprep.subr.mxu0 %v477_v8  ;;  %884 = vmatpush3.msra.mxu1 %v592_v17  ;;  %v467_v23 = vld [vmem:[%s1424_s9 + $0x78] sm:$0xff]  ;;  %v590_v24 = vld [vmem:[%s1431_s11 + $0x68] sm:$0xff]  ;;  %v466_v25 = vld [vmem:[%s1424_s9 + $0x70] sm:$0xff] }
  0xa2   : > { %503 = vmatpush1.msra.mxu0 %v476_v9  ;;  %885 = vmatprep.subr.mxu1 %v607_v19  ;;  %v605_v26 = vld [vmem:[%s1431_s11 + $0xe0] sm:$0xff]  ;;  %v465_v27 = vld [vmem:[%s1424_s9 + $0x68] sm:$0xff]  ;;  %v604_v30 = vld [vmem:[%s1431_s11 + $0xd8] sm:$0xff]  ;;  %v487_v8 = vshrl.u32 %v486_v7, 7 }
  0xa3   : > { %504 = vmatprep.subr.mxu0 %v475_v10  ;;  %886 = vmatpush3.msra.mxu1 %v591_v20  ;;  %v589_v28 = vld [vmem:[%s1431_s11 + $0x60] sm:$0xff]  ;;  %v463_v31 = vld [vmem:[%s1424_s9 + $0x58] sm:$0xff]  ;;  %v462_v33 = vld [vmem:[%s1424_s9 + $0x50] sm:$0xff] }
  0xa4   : > { %505 = vmatpush1.msra.mxu0 %v474_v11  ;;  %887 = vmatprep.subr.mxu1 %v606_v22  ;;  %v464_v29 = vld [vmem:[%s1424_s9 + $0x60] sm:$0xff]  ;;  %v588_v32 = vld [vmem:[%s1431_s11 + $0x58] sm:$0xff]  ;;  %v603_v34 = vld [vmem:[%s1431_s11 + $0xd0] sm:$0xff]  ;;  %v488_v9 = vsub.s32 0, %v487_v8  ;;  %v492_v11 = vsub.s32 1, %v487_v8 }
  0xa5   : > { %506 = vmatprep.subr.mxu0 %v473_v12  ;;  %888 = vmatpush3.msra.mxu1 %v590_v24  ;;  %v461_v35 = vld [vmem:[%s1424_s9 + $0x48] sm:$0xff]  ;;  %v587_v36 = vld [vmem:[%s1431_s11 + $0x50] sm:$0xff]  ;;  %v460_v37 = vld [vmem:[%s1424_s9 + $0x40] sm:$0xff] }
  0xa6   : > { %507 = vmatpush1.msra.mxu0 %v472_v13  ;;  %889 = vmatprep.subr.mxu1 %v605_v26  ;;  %v602_v38 = vld [vmem:[%s1431_s11 + $0xc8] sm:$0xff]  ;;  %v459_v39 = vld [vmem:[%s1424_s9 + $0x38] sm:$0xff]  ;;  %v458_v41 = vld [vmem:[%s1424_s9 + $0x30] sm:$0xff] }
  0xa7   : > { %508 = vmatprep.subr.mxu0 %v471_v14  ;;  %890 = vmatpush3.msra.mxu1 %v589_v28  ;;  %v586_v40 = vld [vmem:[%s1431_s11 + $0x48] sm:$0xff]  ;;  %v601_v42 = vld [vmem:[%s1431_s11 + $0xc0] sm:$0xff]  ;;  %v600_v46 = vld [vmem:[%s1431_s11 + $0xb8] sm:$0xff] }
  0xa8   : > { %509 = vmatpush1.msra.mxu0 %v470_v15  ;;  %891 = vmatprep.subr.mxu1 %v604_v30  ;;  %v457_v43 = vld [vmem:[%s1424_s9 + $0x28] sm:$0xff]  ;;  %v585_v44 = vld [vmem:[%s1431_s11 + $0x40] sm:$0xff]  ;;  %v455_v47 = vld [vmem:[%s1424_s9 + $0x18] sm:$0xff] }
  0xa9   : > { %510 = vmatprep.subr.mxu0 %v469_v18  ;;  %892 = vmatpush3.msra.mxu1 %v588_v32  ;;  %v456_v45 = vld [vmem:[%s1424_s9 + $0x20] sm:$0xff]  ;;  %v584_v48 = vld [vmem:[%s1431_s11 + $0x38] sm:$0xff]  ;;  %v454_v49 = vld [vmem:[%s1424_s9 + $0x10] sm:$0xff] }
  0xaa   : > { %511 = vmatpush1.msra.mxu0 %v468_v21  ;;  %893 = vmatprep.subr.mxu1 %v603_v34  ;;  %v599_v50 = vld [vmem:[%s1431_s11 + $0xb0] sm:$0xff]  ;;  %v453_v51 = vld [vmem:[%s1424_s9 + $0x8] sm:$0xff]  ;;  %v452_v53 = vld [vmem:[%s1424_s9] sm:$0xff] }
  0xab   : > { %512 = vmatprep.subr.mxu0 %v467_v23  ;;  %894 = vmatpush3.msra.mxu1 %v587_v36  ;;  %v583_v52 = vld [vmem:[%s1431_s11 + $0x30] sm:$0xff]  ;;  %v598_v54 = vld [vmem:[%s1431_s11 + $0xa8] sm:$0xff]  ;;  %v450_v55 = vld [vmem:[%s1573_s2] sm:$0xff] }
  0xac   : > { %513 = vmatpush1.msra.mxu0 %v466_v25  ;;  %895 = vmatprep.subr.mxu1 %v602_v38  ;;  %v582_v56 = vld [vmem:[%s1431_s11 + $0x28] sm:$0xff]  ;;  %v597_v57 = vld [vmem:[%s1431_s11 + $0xa0] sm:$0xff]  ;;  %v596_v60 = vld [vmem:[%s1431_s11 + $0x98] sm:$0xff] }
  0xad   : > { %514 = vmatprep.subr.mxu0 %v465_v27  ;;  %896 = vmatpush3.msra.mxu1 %v586_v40  ;;  %v581_v58 = vld [vmem:[%s1431_s11 + $0x20] sm:$0xff]  ;;  %v451_v59 = vld [vmem:[%s1573_s2 + $0x8] sm:$0xff]  ;;  %v580_v61 = vld [vmem:[%s1431_s11 + $0x18] sm:$0xff] }
  0xae   : > { %515 = vmatpush1.msra.mxu0 %v464_v29  ;;  %897 = vmatprep.subr.mxu1 %v601_v42  ;;  %v595_v62 = vld [vmem:[%s1431_s11 + $0x90] sm:$0xff]  ;;  %v594_v0 = vld [vmem:[%s1431_s11 + $0x88] sm:$0xff]  ;;  %v593_v2 = vld [vmem:[%s1431_s11 + $0x80] sm:$0xff] }
  0xaf   : > { %516 = vmatprep.subr.mxu0 %v463_v31  ;;  %898 = vmatpush3.msra.mxu1 %v585_v44  ;;  %v579_v63 = vld [vmem:[%s1431_s11 + $0x10] sm:$0xff]  ;;  %v578_v1 = vld [vmem:[%s1431_s11 + $0x8] sm:$0xff]  ;;  %v577_v3 = vld [vmem:[%s1431_s11] sm:$0xff] }
  0xb0   : > { %517 = vmatpush1.msra.mxu0 %v462_v33  ;;  %899 = vmatprep.subr.mxu1 %v600_v46  ;;  %v686_v4 = vld [vmem:[%s1443_s28] sm:$0xff]  ;;  %v687_v6 = vld [vmem:[%s1443_s28 + $0x8] sm:$0xff] }
  0xb1   : > { %518 = vmatprep.subr.mxu0 %v461_v35  ;;  %900 = vmatpush3.msra.mxu1 %v584_v48  ;;  %v484_v10 = vld [vmem:[%s1448_s16] sm:$0x3] }
  0xb2   : > { %519 = vmatpush1.msra.mxu0 %v460_v37  ;;  %901 = vmatprep.subr.mxu1 %v599_v50  ;;  %v489_v12 = vrot.slane %v484_v10, %v488_v9  ;;  %v493_v13 = vrot.slane %v484_v10, %v492_v11  ;;  %v684_v30 = vld [vmem:[%s1578_s7] sm:$0xff]  ;;  %v685_v37 = vld [vmem:[%s1578_s7 + $0x8] sm:$0xff] }
  0xb3   : > { %520 = vmatprep.subr.mxu0 %v459_v39  ;;  %902 = vmatpush3.msra.mxu1 %v583_v52 }
  0xb4   : > { %521 = vmatpush1.msra.mxu0 %v458_v41  ;;  %903 = vmatprep.subr.mxu1 %v598_v54 }
  0xb5   : > { %522 = vmatprep.subr.mxu0 %v457_v43  ;;  %904 = vmatpush3.msra.mxu1 %v582_v56 }
  0xb6   : > { %523 = vmatpush1.msra.mxu0 %v456_v45  ;;  %905 = vmatprep.subr.mxu1 %v597_v57 }
  0xb7   : > { %524 = vmatprep.subr.mxu0 %v455_v47  ;;  %906 = vmatpush3.msra.mxu1 %v581_v58 }
  0xb8   : > { %525 = vmatpush1.msra.mxu0 %v454_v49  ;;  %907 = vmatprep.subr.mxu1 %v596_v60 }
  0xb9   : > { %526 = vmatprep.subr.mxu0 %v453_v51  ;;  %908 = vmatpush3.msra.mxu1 %v580_v61 }
  0xba   : > { %527 = vmatpush1.msra.mxu0 %v452_v53  ;;  %909 = vmatprep.subr.mxu1 %v595_v62 }
  0xbb   : > { %561 = vmatmul.mubr.f32.vlgmr.msra.gmra.mxu0 %v450_v55  ;;  %910 = vmatpush3.msra.mxu1 %v579_v63 }
  0xbc   : > { %566 = vmatprep.mubr.f32.mxu0 %v1180_v5  ;;  %911 = vmatprep.subr.mxu1 %v594_v0  ;;  %v1181_v5 = vmov 0  }
  0xbd   : > { %912 = vmatpush3.msra.mxu1 %v578_v1  ;;  %1021 = vset.pattern.permute.xlu0 %v1181_v5 }
  0xbe   : > { %913 = vmatprep.subr.mxu1 %v593_v2  ;;  %690 = vperm.xlu0 %1021, %v686_v4  }
  0xbf   : > { %567 = vmatmul.mubr.f32.gmra.mxu0 %v451_v59  ;;  %914 = vmatpush3.msra.mxu1 %v577_v3 }
  0xc2   : > { %695 = vperm.xlu0 %1021, %v687_v6  }
 0x139   : > { %v691_v27 = vpop.permute.xlu0 %690 }
 0x13d   : > { %v696_v36 = vpop.permute.xlu0 %695 }
 0x17b   : > { %v562_v14 = vpop.f32.mrf.mxu0 }
 0x17c   : > { %v563_v15 = vadd.f32 %v562_v14, %v489_v12 }
 0x17d   : > { %v564_v16 = vpop.f32.mrf.mxu0 }
 0x17e   : > { %v565_v17 = vadd.f32 %v564_v16, %v493_v13  ;;  %v573_v20 = vmax.f32 %v563_v15, 0.0 }
 0x17f   : > { %v568_v18 = vpop.f32.mrf.mxu0 }
 0x180   : > { %v574_v19 = vmax.f32 %v565_v17, 0.0  ;;  %v569_v21 = vadd.f32 %v568_v18, %v489_v12 }
 0x181   : > { %v570_v22 = vpop.f32.mrf.mxu0 }
 0x182   : > { %v571_v23 = vadd.f32 %v570_v22, %v493_v13  ;;  %673 = vmatprep.mubr.f32.mxu1 %v574_v19  ;;  %v575_v25 = vmax.f32 %v569_v21, 0.0 }
 0x183   : > { %674 = vmatmul.mubr.f32.vlgmr.msra.gmra.mxu1 %v573_v20 }
 0x184   : > { %v576_v24 = vmax.f32 %v571_v23, 0.0 }
 0x186   : > { %678 = vmatprep.mubr.f32.mxu1 %v576_v24 }
 0x187   : > { %679 = vmatmul.mubr.f32.gmra.mxu1 %v575_v25 }
 0x243   : > { %v915_v26 = vpop.f32.mrf.mxu1 }
 0x245   : > { %v916_v28 = vpop.f32.mrf.mxu1 }
 0x246   : > { %v917_v29 = vadd.f32 %v916_v28, %v915_v26 }
 0x247   : > { %v918_v31 = vpop.f32.mrf.mxu1 }
 0x248   : > { %v698_v32 = vmul.f32 %v917_v29, %v691_v27 }
 0x249   : > { %v919_v33 = vpop.f32.mrf.mxu1 }
 0x24a   : > { %v700_v34 = vadd.f32 %v698_v32, %v684_v30  ;;  %v920_v35 = vadd.f32 %v919_v33, %v918_v31 }
 0x24c   : > { %702 = vst [vmem:[%s1578_s7] sm:$0xff] %v700_v34  ;;  %v699_v38 = vmul.f32 %v920_v35, %v696_v36 }
 0x24e   : > { %v701_v39 = vadd.f32 %v699_v38, %v685_v37 }
 0x250   : > { %703 = vst [vmem:[%s1578_s7 + $0x8] sm:$0xff] %v701_v39 }
 0x251 PF: > { %s30_s14 = sadd.s32 1, %s1170_s14   ;;  %s1605_s26 = sld [smem:[#allocation16_spill]] }
 0x252   : > { %p27_p3 = scmp.ge.s32.totalorder %s30_s14, 10   ;;  %s1606_s11 = sld [smem:[#allocation18_spill]] }
 0x253   : > { %s1607_s16 = sld [smem:[#allocation17_spill]]  ;;  %s1608_s0 = smov %s1142_s1 }
 0x254   : > { %s1609_s1 = smov %s1146_s8  ;;  %s1610_s8 = smov %s1386_s27 }
 0x255   : > { %s1611_s9 = smov %s1154_s10  ;;  %s1613_s12 = smov %s1166_s13 }
 0x256   :  { %29 = sbr.rel (!%p27_p3) target bundleno = 23 (0x17), region = 110 }
 0x257   : > { %s1612_s10 = smov %s1605_s26 }
 0x259   : > { %s1614_s13 = smov %s1607_s16 }
 0x25b   :  { %726 = vsyncpa [#allocation6], 1 }
 0x25c   :  { %728 = vsyncpa [#allocation6 + $0x1], 1 }
 0x25d   :  { %729 = vsyncpa [#allocation8], 1 }
 0x25e   :  { %731 = vsyncpa [#allocation8 + $0x1], 1 }

</bundles_post_ra>
